<compile_context>
chip_gen: v7x
topology: tpu7x:2x2x1
jax: 0.10.0
libtpu: 0.0.40
codegen_flags: <defaults>
</compile_context>

<pallas_src>
import math

import jax
import jax.numpy as jnp
from jax.experimental import pallas as pl
from jax.experimental.pallas import tpu as pltpu


def _round_up(n, m):
    return (n + m - 1) // m * m


def vae_forward(x, eps, params):
    """Fused VAE forward.

    x:   (B, input_dim) float32
    eps: (B, latent_dim) float32, eps ~ N(0,1) (sampled outside the kernel)
    params: dict of weights (in, out) and biases (1, out)
    Returns (generated_x, z_mu, z_logvar, z), matching the PyTorch module.
    """
    B, IN = x.shape
    L = eps.shape[-1]
    H = params["enc_w1"].shape[1]
    out_dtype = x.dtype

    # ---------- host-side packing (trivial one-time XLA ops; pre-pack in a real loop) ----------
    # Fused mu/logvar projection: one (H, 2L) matmul instead of two N=32 matmuls.
    wmv = jnp.concatenate([params["mu_w"], params["var_w"]], axis=1)        # (H, 2L)
    bmv = jnp.concatenate([params["mu_b"], params["var_b"]], axis=1)        # (1, 2L)

    # Pack all biases into one lane-dense slab; each segment padded to 128 lanes
    # so in-kernel slices start at 128-aligned lane offsets.
    bias_parts = [params["enc_b1"], params["enc_b2"], bmv,
                  params["dec_b1"], params["dec_b2"], params["dec_b3"]]
    bias_offsets, off = [], 0
    for p in bias_parts:
        bias_offsets.append(off)
        off += _round_up(p.shape[1], 128)
    bias_total = off
    bias_packed = jnp.concatenate(
        [jnp.pad(p, ((0, 0), (0, _round_up(p.shape[1], 128) - p.shape[1])))
         for p in bias_parts], axis=1)                                       # (1, bias_total)

    # Packed latent output: [mu | logvar | z | pad] -> lane-dense width.
    LAT_PACK = _round_up(3 * L, 128)

    # ---------- batch tiling: fixed 8-aligned tile, padded tail ----------
    if B >= 512:
        TB = 256                                  # fills v6e/v7x 256-wide MXU rows
    elif B >= 256:
        TB = 128
    elif B >= 16:
        TB = _round_up((B + 1) // 2, 8)           # >=2 grid steps -> v7x megacore split
    else:
        TB = _round_up(max(B, 8), 8)              # tiny demo batch: one sublane-aligned tile
    grid_b = pl.cdiv(B, TB)
    B_pad = grid_b * TB
    if B_pad != B:
        x = jnp.pad(x, ((0, B_pad - B), (0, 0)))
        eps = jnp.pad(eps, ((0, B_pad - B), (0, 0)))

    # ---------- kernel ----------
    def kernel(x_ref, eps_ref,
               ew1_ref, ew2_ref, wmv_ref, dw1_ref, dw2_ref, dw3_ref,
               bias_ref, gen_ref, lat_ref):
        def bias(idx, width):
            o = bias_offsets[idx]
            return bias_ref[:, o:o + width].astype(jnp.float32)

        def dense(a, w_ref, bidx, width):
            w = w_ref[...]
            # bf16 weights -> native bf16 MXU path; accumulation stays f32.
            return jnp.dot(a.astype(w.dtype), w,
                           preferred_element_type=jnp.float32) + bias(bidx, width)

        x_t = x_ref[...].astype(jnp.float32)

        # ---------------- encoder ----------------
        h = jnp.maximum(dense(x_t, ew1_ref, 0, H), 0.0)
        h = jnp.maximum(dense(h, ew2_ref, 1, H), 0.0)
        mulv = dense(h, wmv_ref, 2, 2 * L)               # fused (mu | logvar)
        mu = mulv[:, :L]
        logvar = mulv[:, L:]

        # --------- reparameterization: z = mu + exp(logvar/2) * eps ---------
        z = mu + jnp.exp(logvar * 0.5) * eps_ref[...].astype(jnp.float32)

        # ---------------- decoder ----------------
        d = jnp.maximum(dense(z, dw1_ref, 3, H), 0.0)
        d = jnp.maximum(dense(d, dw2_ref, 4, H), 0.0)
        logits = dense(d, dw3_ref, 5, IN)
        # sigmoid: exp and reciprocal both on the EUP slot (approx recip is free).
        gen = pl.reciprocal(1.0 + jnp.exp(-logits), approx=True)

        gen_ref[...] = gen.astype(gen_ref.dtype)

        # One lane-dense packed store: [mu | logvar | z | pad].
        pieces = [mulv, z]
        pad = LAT_PACK - 3 * L
        if pad:
            pieces.append(jnp.zeros((z.shape[0], pad), jnp.float32))
        lat_ref[...] = jnp.concatenate(pieces, axis=-1).astype(lat_ref.dtype)

    # ---------- specs ----------
    def row_spec(cols):
        return pl.BlockSpec((TB, cols), lambda i: (i, 0))

    def full_spec(shape):
        # Constant index map -> weights stay resident. (If hidden_dim is ever
        # scaled up, switch these to pipeline_mode=pl.Buffered(1) or a manual
        # one-shot DMA to avoid double-buffered weight copies in VMEM.)
        return pl.BlockSpec(shape, lambda i: (0,) * len(shape))

    in_specs = [
        row_spec(IN), row_spec(L),
        full_spec((IN, H)), full_spec((H, H)), full_spec((H, 2 * L)),
        full_spec((L, H)), full_spec((H, H)), full_spec((H, IN)),
        full_spec((1, bias_total)),
    ]
    out_shapes = (
        jax.ShapeDtypeStruct((B_pad, IN), out_dtype),        # generated_x
        jax.ShapeDtypeStruct((B_pad, LAT_PACK), out_dtype),  # packed (mu|logvar|z)
    )
    out_specs = [row_spec(IN), row_spec(LAT_PACK)]

    # Advisory cost estimate.
    flops = 2 * B_pad * (IN * H + H * H + H * 2 * L + L * H + H * H + H * IN)
    transcendentals = B_pad * (L + 2 * IN)                   # exp(std), exp+recip(sigmoid)
    itemsize = jnp.dtype(out_dtype).itemsize
    weight_elems = IN * H + H * H + H * 2 * L + L * H + H * H + H * IN + bias_total
    bytes_accessed = itemsize * (B_pad * (IN + L) + weight_elems
                                 + B_pad * (IN + LAT_PACK))

    gen, lat = pl.pallas_call(
        kernel,
        out_shape=out_shapes,
        grid_spec=pltpu.PrefetchScalarGridSpec(
            num_scalar_prefetch=0,
            grid=(grid_b,),
            in_specs=in_specs,
            out_specs=out_specs,
        ),
        compiler_params=pltpu.CompilerParams(
            dimension_semantics=("parallel",),
        ),
        cost_estimate=pl.CostEstimate(
            flops=flops,
            transcendentals=transcendentals,
            bytes_accessed=bytes_accessed,
        ),
    )(x, eps,
      params["enc_w1"], params["enc_w2"], wmv,
      params["dec_w1"], params["dec_w2"], params["dec_w3"],
      bias_packed)

    gen = gen[:B]
    mu = lat[:B, :L]
    logvar = lat[:B, L:2 * L]
    z = lat[:B, 2 * L:3 * L]
    return gen, mu, logvar, z


def vae_forward_ref(x, eps, params):
    """Pure-JAX reference matching the PyTorch forward."""
    h = jax.nn.relu(x @ params["enc_w1"] + params["enc_b1"])
    h = jax.nn.relu(h @ params["enc_w2"] + params["enc_b2"])
    mu = h @ params["mu_w"] + params["mu_b"]
    logvar = h @ params["var_w"] + params["var_b"]
    z = mu + jnp.exp(logvar / 2.0) * eps
    d = jax.nn.relu(z @ params["dec_w1"] + params["dec_b1"])
    d = jax.nn.relu(d @ params["dec_w2"] + params["dec_b2"])
    gen = jax.nn.sigmoid(d @ params["dec_w3"] + params["dec_b3"])
    return gen, mu, logvar, z


def _init_params(key, input_dim, hidden_dim, latent_dim, dtype=jnp.float32):
    layer_shapes = {
        "enc_w1": (input_dim, hidden_dim),
        "enc_w2": (hidden_dim, hidden_dim),
        "mu_w": (hidden_dim, latent_dim),
        "var_w": (hidden_dim, latent_dim),
        "dec_w1": (latent_dim, hidden_dim),
        "dec_w2": (hidden_dim, hidden_dim),
        "dec_w3": (hidden_dim, input_dim),
    }
    bias_names = {
        "enc_w1": "enc_b1", "enc_w2": "enc_b2", "mu_w": "mu_b", "var_w": "var_b",
        "dec_w1": "dec_b1", "dec_w2": "dec_b2", "dec_w3": "dec_b3",
    }
    params = {}
    keys = jax.random.split(key, 2 * len(layer_shapes))
    for i, (name, shape) in enumerate(layer_shapes.items()):
        scale = 1.0 / math.sqrt(shape[0])
        params[name] = (scale * jax.random.normal(keys[2 * i], shape)).astype(dtype)
        params[bias_names[name]] = (
            scale * jax.random.normal(keys[2 * i + 1], (1, shape[1]))).astype(dtype)
    return params


if __name__ == "__main__":
    # Small shapes consistent with the module (lane/sublane friendly):
    # batch=8, input_dim=256, hidden_dim=128, latent_dim=32.
    B, INPUT_DIM, HIDDEN_DIM, LATENT_DIM = 8, 256, 128, 32

    key = jax.random.PRNGKey(0)
    k_x, k_eps, k_p = jax.random.split(key, 3)

    x = jax.random.normal(k_x, (B, INPUT_DIM), dtype=jnp.float32)
    # torch.randn_like(std): noise is sampled outside the kernel and passed in
    # so the Pallas kernel and the reference see identical eps.
    eps = jax.random.normal(k_eps, (B, LATENT_DIM), dtype=jnp.float32)
    params = _init_params(k_p, INPUT_DIM, HIDDEN_DIM, LATENT_DIM)

    gen, mu, logvar, z = vae_forward(x, eps, params)
    gen = jax.block_until_ready(gen)

    gen_r, mu_r, logvar_r, z_r = vae_forward_ref(x, eps, params)

    assert gen.shape == (B, INPUT_DIM) and mu.shape == (B, LATENT_DIM)
    assert logvar.shape == (B, LATENT_DIM) and z.shape == (B, LATENT_DIM)
    assert jnp.allclose(mu, mu_r, rtol=2e-3, atol=2e-3), "mu mismatch"
    assert jnp.allclose(logvar, logvar_r, rtol=2e-3, atol=2e-3), "logvar mismatch"
    assert jnp.allclose(z, z_r, rtol=2e-3, atol=2e-3), "z mismatch"
    # sigmoid uses the approx EUP reciprocal -> slightly wider tolerance
    assert jnp.allclose(gen, gen_r, rtol=5e-3, atol=5e-3), "generated_x mismatch"

    print("KERNEL_OK")
</pallas_src>

<mosaic_0001>
module attributes {stable_mosaic.version = 11 : i64} {
  func.func @kernel(%arg0: i32, %arg1: memref<8x256xf32, #tpu.memory_space<vmem>>, %arg2: memref<8x32xf32, #tpu.memory_space<vmem>>, %arg3: memref<256x128xf32, #tpu.memory_space<vmem>>, %arg4: memref<128x128xf32, #tpu.memory_space<vmem>>, %arg5: memref<128x64xf32, #tpu.memory_space<vmem>>, %arg6: memref<32x128xf32, #tpu.memory_space<vmem>>, %arg7: memref<128x128xf32, #tpu.memory_space<vmem>>, %arg8: memref<128x256xf32, #tpu.memory_space<vmem>>, %arg9: memref<1x896xf32, #tpu.memory_space<vmem>>, %arg10: memref<8x256xf32, #tpu.memory_space<vmem>>, %arg11: memref<8x128xf32, #tpu.memory_space<vmem>>) attributes {dimension_semantics = [#tpu.dimension_semantics<parallel>], iteration_bounds = array<i64: 1>, scalar_prefetch = 0 : i64, scratch_operands = 0 : i64, tpu.core_type = #tpu.core_type<tc>, window_params = [{transform_indices = @transform_0, window_bounds = array<i64: 8, 256>}, {transform_indices = @transform_1, window_bounds = array<i64: 8, 32>}, {pipeline_mode = #tpu.pipeline_mode<synchronous>, transform_indices = @transform_2, window_bounds = array<i64: 256, 128>}, {pipeline_mode = #tpu.pipeline_mode<synchronous>, transform_indices = @transform_3, window_bounds = array<i64: 128, 128>}, {pipeline_mode = #tpu.pipeline_mode<synchronous>, transform_indices = @transform_4, window_bounds = array<i64: 128, 64>}, {pipeline_mode = #tpu.pipeline_mode<synchronous>, transform_indices = @transform_5, window_bounds = array<i64: 32, 128>}, {pipeline_mode = #tpu.pipeline_mode<synchronous>, transform_indices = @transform_6, window_bounds = array<i64: 128, 128>}, {pipeline_mode = #tpu.pipeline_mode<synchronous>, transform_indices = @transform_7, window_bounds = array<i64: 128, 256>}, {pipeline_mode = #tpu.pipeline_mode<synchronous>, transform_indices = @transform_8, window_bounds = array<i64: 1, 896>}, {transform_indices = @transform_9, window_bounds = array<i64: 8, 256>}, {transform_indices = @transform_10, window_bounds = array<i64: 8, 128>}]} {
    %c0 = arith.constant 0 : index
    %c0_0 = arith.constant 0 : index
    %0 = vector.load %arg1[%c0, %c0_0] : memref<8x256xf32, #tpu.memory_space<vmem>>, vector<8x256xf32>
    %c0_1 = arith.constant 0 : index
    %c0_2 = arith.constant 0 : index
    %1 = vector.load %arg3[%c0_1, %c0_2] : memref<256x128xf32, #tpu.memory_space<vmem>>, vector<256x128xf32>
    %cst = arith.constant dense<0.000000e+00> : vector<8x128xf32>
    %2 = tpu.matmul %0, %1, %cst {dimension_numbers = #tpu.dot_dimension_numbers<[1], [0], [0], [1], [0, 0, 1, 1], [], []>} : vector<8x256xf32>, vector<256x128xf32>, vector<8x128xf32> -> vector<8x128xf32>
    %c0_3 = arith.constant 0 : index
    %c0_4 = arith.constant 0 : index
    %3 = vector.load %arg9[%c0_3, %c0_4] : memref<1x896xf32, #tpu.memory_space<vmem>>, vector<1x128xf32>
    %4 = vector.broadcast %3 : vector<1x128xf32> to vector<8x128xf32>
    %5 = arith.addf %2, %4 : vector<8x128xf32>
    %cst_5 = arith.constant 0.000000e+00 : f32
    %6 = vector.broadcast %cst_5 : f32 to vector<8x128xf32>
    %7 = arith.maximumf %5, %6 : vector<8x128xf32>
    %c0_6 = arith.constant 0 : index
    %c0_7 = arith.constant 0 : index
    %8 = vector.load %arg4[%c0_6, %c0_7] : memref<128x128xf32, #tpu.memory_space<vmem>>, vector<128x128xf32>
    %cst_8 = arith.constant dense<0.000000e+00> : vector<8x128xf32>
    %9 = tpu.matmul %7, %8, %cst_8 {dimension_numbers = #tpu.dot_dimension_numbers<[1], [0], [0], [1], [0, 0, 1, 1], [], []>} : vector<8x128xf32>, vector<128x128xf32>, vector<8x128xf32> -> vector<8x128xf32>
    %c0_9 = arith.constant 0 : index
    %c128 = arith.constant 128 : index
    %10 = vector.load %arg9[%c0_9, %c128] : memref<1x896xf32, #tpu.memory_space<vmem>>, vector<1x128xf32>
    %11 = vector.broadcast %10 : vector<1x128xf32> to vector<8x128xf32>
    %12 = arith.addf %9, %11 : vector<8x128xf32>
    %cst_10 = arith.constant 0.000000e+00 : f32
    %13 = vector.broadcast %cst_10 : f32 to vector<8x128xf32>
    %14 = arith.maximumf %12, %13 : vector<8x128xf32>
    %c0_11 = arith.constant 0 : index
    %c0_12 = arith.constant 0 : index
    %15 = vector.load %arg5[%c0_11, %c0_12] : memref<128x64xf32, #tpu.memory_space<vmem>>, vector<128x64xf32>
    %cst_13 = arith.constant dense<0.000000e+00> : vector<8x64xf32>
    %16 = tpu.matmul %14, %15, %cst_13 {dimension_numbers = #tpu.dot_dimension_numbers<[1], [0], [0], [1], [0, 0, 1, 1], [], []>} : vector<8x128xf32>, vector<128x64xf32>, vector<8x64xf32> -> vector<8x64xf32>
    %c0_14 = arith.constant 0 : index
    %c256 = arith.constant 256 : index
    %17 = vector.load %arg9[%c0_14, %c256] : memref<1x896xf32, #tpu.memory_space<vmem>>, vector<1x64xf32>
    %18 = vector.broadcast %17 : vector<1x64xf32> to vector<8x64xf32>
    %19 = arith.addf %16, %18 : vector<8x64xf32>
    %20 = vector.extract_strided_slice %19 {offsets = [0, 0], sizes = [8, 32], strides = [1, 1]} : vector<8x64xf32> to vector<8x32xf32>
    %21 = vector.extract_strided_slice %19 {offsets = [0, 32], sizes = [8, 32], strides = [1, 1]} : vector<8x64xf32> to vector<8x32xf32>
    %cst_15 = arith.constant 5.000000e-01 : f32
    %22 = vector.broadcast %cst_15 : f32 to vector<8x32xf32>
    %23 = arith.mulf %21, %22 : vector<8x32xf32>
    %24 = math.exp %23 : vector<8x32xf32>
    %c0_16 = arith.constant 0 : index
    %c0_17 = arith.constant 0 : index
    %25 = vector.load %arg2[%c0_16, %c0_17] : memref<8x32xf32, #tpu.memory_space<vmem>>, vector<8x32xf32>
    %26 = arith.mulf %24, %25 : vector<8x32xf32>
    %27 = arith.addf %20, %26 : vector<8x32xf32>
    %c0_18 = arith.constant 0 : index
    %c0_19 = arith.constant 0 : index
    %28 = vector.load %arg6[%c0_18, %c0_19] : memref<32x128xf32, #tpu.memory_space<vmem>>, vector<32x128xf32>
    %cst_20 = arith.constant dense<0.000000e+00> : vector<8x128xf32>
    %29 = tpu.matmul %27, %28, %cst_20 {dimension_numbers = #tpu.dot_dimension_numbers<[1], [0], [0], [1], [0, 0, 1, 1], [], []>} : vector<8x32xf32>, vector<32x128xf32>, vector<8x128xf32> -> vector<8x128xf32>
    %c0_21 = arith.constant 0 : index
    %c384 = arith.constant 384 : index
    %30 = vector.load %arg9[%c0_21, %c384] : memref<1x896xf32, #tpu.memory_space<vmem>>, vector<1x128xf32>
    %31 = vector.broadcast %30 : vector<1x128xf32> to vector<8x128xf32>
    %32 = arith.addf %29, %31 : vector<8x128xf32>
    %cst_22 = arith.constant 0.000000e+00 : f32
    %33 = vector.broadcast %cst_22 : f32 to vector<8x128xf32>
    %34 = arith.maximumf %32, %33 : vector<8x128xf32>
    %c0_23 = arith.constant 0 : index
    %c0_24 = arith.constant 0 : index
    %35 = vector.load %arg7[%c0_23, %c0_24] : memref<128x128xf32, #tpu.memory_space<vmem>>, vector<128x128xf32>
    %cst_25 = arith.constant dense<0.000000e+00> : vector<8x128xf32>
    %36 = tpu.matmul %34, %35, %cst_25 {dimension_numbers = #tpu.dot_dimension_numbers<[1], [0], [0], [1], [0, 0, 1, 1], [], []>} : vector<8x128xf32>, vector<128x128xf32>, vector<8x128xf32> -> vector<8x128xf32>
    %c0_26 = arith.constant 0 : index
    %c512 = arith.constant 512 : index
    %37 = vector.load %arg9[%c0_26, %c512] : memref<1x896xf32, #tpu.memory_space<vmem>>, vector<1x128xf32>
    %38 = vector.broadcast %37 : vector<1x128xf32> to vector<8x128xf32>
    %39 = arith.addf %36, %38 : vector<8x128xf32>
    %cst_27 = arith.constant 0.000000e+00 : f32
    %40 = vector.broadcast %cst_27 : f32 to vector<8x128xf32>
    %41 = arith.maximumf %39, %40 : vector<8x128xf32>
    %c0_28 = arith.constant 0 : index
    %c0_29 = arith.constant 0 : index
    %42 = vector.load %arg8[%c0_28, %c0_29] : memref<128x256xf32, #tpu.memory_space<vmem>>, vector<128x256xf32>
    %cst_30 = arith.constant dense<0.000000e+00> : vector<8x256xf32>
    %43 = tpu.matmul %41, %42, %cst_30 {dimension_numbers = #tpu.dot_dimension_numbers<[1], [0], [0], [1], [0, 0, 1, 1], [], []>} : vector<8x128xf32>, vector<128x256xf32>, vector<8x256xf32> -> vector<8x256xf32>
    %c0_31 = arith.constant 0 : index
    %c640 = arith.constant 640 : index
    %44 = vector.load %arg9[%c0_31, %c640] : memref<1x896xf32, #tpu.memory_space<vmem>>, vector<1x256xf32>
    %45 = vector.broadcast %44 : vector<1x256xf32> to vector<8x256xf32>
    %46 = arith.addf %43, %45 : vector<8x256xf32>
    %cst_32 = arith.constant 0.000000e+00 : f32
    %47 = vector.broadcast %cst_32 : f32 to vector<8x256xf32>
    %48 = arith.subf %47, %46 : vector<8x256xf32>
    %49 = math.exp %48 : vector<8x256xf32>
    %cst_33 = arith.constant 1.000000e+00 : f32
    %50 = vector.broadcast %cst_33 : f32 to vector<8x256xf32>
    %51 = arith.addf %50, %49 : vector<8x256xf32>
    %52 = tpu.reciprocal %51 {approx = true} : vector<8x256xf32> -> vector<8x256xf32>
    %c0_34 = arith.constant 0 : index
    %c0_35 = arith.constant 0 : index
    %53 = vector.load %arg10[%c0_34, %c0_35] : memref<8x256xf32, #tpu.memory_space<vmem>>, vector<8x256xf32>
    tpu.vector_store %arg10[%c0_34, %c0_35], %52 {strides = array<i32>} : memref<8x256xf32, #tpu.memory_space<vmem>>, vector<8x256xf32>,
    %cst_36 = arith.constant 0.000000e+00 : f32
    %54 = vector.broadcast %cst_36 : f32 to vector<8x32xf32>
    %55 = tpu.concatenate %19, %27, %54 in 1 : vector<8x64xf32>, vector<8x32xf32>, vector<8x32xf32> -> vector<8x128xf32>
    %c0_37 = arith.constant 0 : index
    %c0_38 = arith.constant 0 : index
    %56 = vector.load %arg11[%c0_37, %c0_38] : memref<8x128xf32, #tpu.memory_space<vmem>>, vector<8x128xf32>
    tpu.vector_store %arg11[%c0_37, %c0_38], %55 {strides = array<i32>} : memref<8x128xf32, #tpu.memory_space<vmem>>, vector<8x128xf32>,
    return
  }
  func.func @transform_0(%arg0: i32) -> (i32, i32) {
    %c0_i32 = arith.constant 0 : i32
    %c0_i32_0 = arith.constant 0 : i32
    return %arg0, %c0_i32 : i32, i32
  }
  func.func @transform_1(%arg0: i32) -> (i32, i32) {
    %c0_i32 = arith.constant 0 : i32
    %c0_i32_0 = arith.constant 0 : i32
    return %arg0, %c0_i32 : i32, i32
  }
  func.func @transform_2(%arg0: i32) -> (i32, i32) {
    %c0_i32 = arith.constant 0 : i32
    %c0_i32_0 = arith.constant 0 : i32
    %c0_i32_1 = arith.constant 0 : i32
    return %c0_i32, %c0_i32_0 : i32, i32
  }
  func.func @transform_3(%arg0: i32) -> (i32, i32) {
    %c0_i32 = arith.constant 0 : i32
    %c0_i32_0 = arith.constant 0 : i32
    %c0_i32_1 = arith.constant 0 : i32
    return %c0_i32, %c0_i32_0 : i32, i32
  }
  func.func @transform_4(%arg0: i32) -> (i32, i32) {
    %c0_i32 = arith.constant 0 : i32
    %c0_i32_0 = arith.constant 0 : i32
    %c0_i32_1 = arith.constant 0 : i32
    return %c0_i32, %c0_i32_0 : i32, i32
  }
  func.func @transform_5(%arg0: i32) -> (i32, i32) {
    %c0_i32 = arith.constant 0 : i32
    %c0_i32_0 = arith.constant 0 : i32
    %c0_i32_1 = arith.constant 0 : i32
    return %c0_i32, %c0_i32_0 : i32, i32
  }
  func.func @transform_6(%arg0: i32) -> (i32, i32) {
    %c0_i32 = arith.constant 0 : i32
    %c0_i32_0 = arith.constant 0 : i32
    %c0_i32_1 = arith.constant 0 : i32
    return %c0_i32, %c0_i32_0 : i32, i32
  }
  func.func @transform_7(%arg0: i32) -> (i32, i32) {
    %c0_i32 = arith.constant 0 : i32
    %c0_i32_0 = arith.constant 0 : i32
    %c0_i32_1 = arith.constant 0 : i32
    return %c0_i32, %c0_i32_0 : i32, i32
  }
  func.func @transform_8(%arg0: i32) -> (i32, i32) {
    %c0_i32 = arith.constant 0 : i32
    %c0_i32_0 = arith.constant 0 : i32
    %c0_i32_1 = arith.constant 0 : i32
    return %c0_i32, %c0_i32_0 : i32, i32
  }
  func.func @transform_9(%arg0: i32) -> (i32, i32) {
    %c0_i32 = arith.constant 0 : i32
    %c0_i32_0 = arith.constant 0 : i32
    return %arg0, %c0_i32 : i32, i32
  }
  func.func @transform_10(%arg0: i32) -> (i32, i32) {
    %c0_i32 = arith.constant 0 : i32
    %c0_i32_0 = arith.constant 0 : i32
    return %arg0, %c0_i32 : i32, i32
  }
}

</mosaic_0001>

<bundles_post_ra>
// kernel: tpu_custom_call.1
= control target key start
LH: loop header
LB: loop body
LE: loop exit
PB: predicated region body
PF: predicated region fallthrough
CT: control target
= control target key end

     0   :  { %16 = vsyncpa [#allocation3], 0  ;;  %s1545_s0 = inlined_call_operand.vmem [shape: f32[8,256], index: 0, kind: input, shape index: {}]   ;;  %s1546_s1 = inlined_call_operand.vmem [shape: f32[8,32], index: 1, kind: input, shape index: {}]   ;;  %s1547_s2 = inlined_call_operand.hbm [shape: f32[256,128], index: 2, kind: input, shape index: {}]   ;;  %s1548_s3 = inlined_call_operand.vmem [shape: f32[128,128], index: 3, kind: input, shape index: {}]   ;;  %s1549_s4 = inlined_call_operand.vmem [shape: f32[128,64], index: 4, kind: input, shape index: {}]   ;;  %s1550_s5 = inlined_call_operand.vmem [shape: f32[32,128], index: 5, kind: input, shape index: {}]   ;;  %s1551_s6 = inlined_call_operand.hbm [shape: f32[128,128], index: 6, kind: input, shape index: {}]   ;;  %s1552_s7 = inlined_call_operand.hbm [shape: f32[128,256], index: 7, kind: input, shape index: {}]   ;;  %s1553_s8 = inlined_call_operand.vmem [shape: f32[1,896], index: 8, kind: input, shape index: {}]   ;;  %s1554_s9 = inlined_call_operand.hbm [shape: f32[8,256], index: 9, kind: output, shape index: {0}]   ;;  %s1555_s10 = inlined_call_operand.hbm [shape: f32[8,128], index: 10, kind: output, shape index: {1}]  }
   0x1   :  { %17 = vsyncpa [#allocation6], 0 }
   0x2   :  { %18 = vsyncpa [#allocation4], 0 }
   0x3   :  { %19 = vsyncpa [#allocation10], 0  ;;  %s1233_s13 = smov [#allocation5]   ;;  %s1234_s15 = smov [#allocation2]  }
   0x4   :  { %s47_s14 = sshll.u32 %s1233_s13, 4  ;;  %s29_s16 = sshll.u32 %s1234_s15, 4  ;;  %s48_s14 = int_to_ptr.vmem [resolvable:$true] %s47_s14  ;;  %s1303_s16 = int_to_ptr.vmem [resolvable:$true] %s29_s16 }
   0x5   :  { %s1115_s19 = scalar_lea.hbm %s1551_s6, 2048 }
   0x6   :  { %p1116_p0 = scmp.ne.s32.totalorder %s1551_s6, %s1115_s19  ;;  %p1119_p1 = scmp.lt.u32.totalorder %s1115_s19, %s1551_s6 }
   0x8   :  { %p1121_p2 = pnand %p1119_p1, %p1116_p0 }
   0xa   :  { %1124 = shalt.err (!%p1121_p2)
}
   0xb   :  { %s1125_s24 = scalar_lea.vmem %s48_s14, 2048  ;;  %p1130_p4 = scmp.lt.s32.totalorder %s48_s14, %s48_s14 }
   0xc   :  { %p1126_p3 = scmp.ne.s32.totalorder %s48_s14, %s1125_s24  ;;  %p1131_p5 = scmp.lt.s32.totalorder %s1125_s24, %s1125_s24 }
   0xe   :  { %p1132_p6 = por %p1131_p5, %p1130_p4 }
  0x10   :  { %p1133_p7 = pnand %p1132_p6, %p1126_p3 }
  0x12   :  { %1136 = shalt.err (!%p1133_p7)
}
  0x13   :  { %s1235_s25 = smov 128   ;;  %s1236_s26 = smov 8  }
  0x14   :  { %53 = dma.hbm_to_vmem [thread:$0]  %s1551_s6, 2048, %s48_s14, [#allocation6], %s1235_s25, %s1235_s25, %s1236_s26  }
  0x15   :  { %s1137_s11 = scalar_lea.hbm %s1547_s2, 4096 }
  0x16   :  { %p1138_p8 = scmp.ne.s32.totalorder %s1547_s2, %s1137_s11  ;;  %p1141_p9 = scmp.lt.u32.totalorder %s1137_s11, %s1547_s2 }
  0x18   :  { %p1143_p10 = pnand %p1141_p9, %p1138_p8 }
  0x1a   :  { %1146 = shalt.err (!%p1143_p10)
}
  0x1b   :  { %s1147_s18 = scalar_lea.vmem %s1303_s16, 4096  ;;  %p1152_p12 = scmp.lt.s32.totalorder %s1303_s16, %s1303_s16 }
  0x1c   :  { %p1148_p11 = scmp.ne.s32.totalorder %s1303_s16, %s1147_s18  ;;  %p1153_p13 = scmp.lt.s32.totalorder %s1147_s18, %s1147_s18 }
  0x1e   :  { %p1154_p0 = por %p1153_p13, %p1152_p12 }
  0x20   :  { %p1155_p1 = pnand %p1154_p0, %p1148_p11 }
  0x22   :  { %1158 = shalt.err (!%p1155_p1)
}
  0x23   :  { %35 = dma.hbm_to_vmem [thread:$0]  %s1547_s2, 4096, %s1303_s16, [#allocation3], %s1235_s25, %s1235_s25, %s1236_s26  }
  0x24   :  { %s1237_s19 = smov [#allocation7]   ;;  %s1159_s23 = scalar_lea.hbm %s1552_s7, 4096 }
  0x25   :  { %s59_s20 = sshll.u32 %s1237_s19, 4  ;;  %p1160_p2 = scmp.ne.s32.totalorder %s1552_s7, %s1159_s23  ;;  %s60_s20 = int_to_ptr.vmem [resolvable:$true] %s59_s20 }
  0x26   :  { %p1163_p3 = scmp.lt.u32.totalorder %s1159_s23, %s1552_s7 }
  0x28   :  { %p1165_p4 = pnand %p1163_p3, %p1160_p2 }
  0x2a   :  { %1168 = shalt.err (!%p1165_p4)
}
  0x2b   :  { %s1169_s30 = scalar_lea.vmem %s60_s20, 4096  ;;  %p1174_p6 = scmp.lt.s32.totalorder %s60_s20, %s60_s20 }
  0x2c   :  { %p1170_p5 = scmp.ne.s32.totalorder %s60_s20, %s1169_s30  ;;  %p1175_p7 = scmp.lt.s32.totalorder %s1169_s30, %s1169_s30 }
  0x2e   :  { %p1176_p8 = por %p1175_p7, %p1174_p6 }
  0x30   :  { %p1177_p9 = pnand %p1176_p8, %p1170_p5 }
  0x32   :  { %1180 = shalt.err (!%p1177_p9)
}
  0x33   :  { %s1238_s2 = smov 256   ;;  %s1239_s16 = smov 16  }
  0x34   :  { %65 = dma.hbm_to_vmem [thread:$0]  %s1552_s7, 4096, %s60_s20, [#allocation6], %s1238_s2, %s1238_s2, %s1239_s16  }
  0x35   :  { %1225 = dma.done.wait [#allocation3], 4096  }
  0x36   :  { %1226 = vsyncadd [#allocation3], 4294963200 }
  0x37   :  { %1227 = dma.done.wait [#allocation6], 6144  }
  0x38   :  { %1228 = vsyncadd [#allocation6], 4294961152  ;;  %v1240_v0 = vmov 0.0|0.0   ;;  %v95_v1 = vld [vmem:[#allocation2 + $0x80] sm:$0xff]  ;;  %v96_v2 = vld [vmem:[#allocation2 + $0x88] sm:$0xff]  ;;  %vm1241_vm0 = vmmov 0  }
  0x39   :  { %980 = vmatprep.subr.bf16.mxu1 %v1240_v0  ;;  %v79_v3 = vld [vmem:[#allocation2] sm:$0xff]  ;;  %v948_v4 = vpack.c.bf16 %v96_v2, %v95_v1  ;;  %v80_v5 = vld [vmem:[#allocation2 + $0x8] sm:$0xff]  ;;  %v97_v6 = vld [vmem:[#allocation2 + $0x90] sm:$0xff]  ;;  %s1243_s26 = smov 32   ;;  %vm401_vm1 = vcmask 261120   ;;  %vm700_vm2 = vcmask 523264  }
  0x3a   :  { %v98_v7 = vld [vmem:[#allocation2 + $0x98] sm:$0xff]  ;;  %v950_v8 = vpack.c.bf16 %v80_v5, %v79_v3  ;;  %v81_v10 = vld [vmem:[#allocation2 + $0x10] sm:$0xff]  ;;  %v99_v12 = vld [vmem:[#allocation2 + $0xa0] sm:$0xff]  ;;  %vm702_vm3 = vcmask 785408   ;;  %s1246_s24 = smov [#allocation9]  }
  0x3b   :  { %v952_v9 = vpack.c.bf16 %v98_v7, %v97_v6  ;;  %v82_v11 = vld [vmem:[#allocation2 + $0x18] sm:$0xff]  ;;  %949 = vmatprep.subr.bf16.mxu0 %v948_v4  ;;  %v100_v13 = vld [vmem:[#allocation2 + $0xa8] sm:$0xff]  ;;  %v83_v16 = vld [vmem:[#allocation2 + $0x20] sm:$0xff]  ;;  %s721_s27 = sshll.u32 %s1246_s24, 4  ;;  %s722_s27 = int_to_ptr.vmem [resolvable:$true] %s721_s27 }
  0x3c   :  { %951 = vmatpush3.bf16.msra.mxu0 %v950_v8  ;;  %v954_v14 = vpack.c.bf16 %v82_v11, %v81_v10  ;;  %v956_v15 = vpack.c.bf16 %v100_v13, %v99_v12  ;;  %v84_v17 = vld [vmem:[#allocation2 + $0x28] sm:$0xff]  ;;  %v101_v18 = vld [vmem:[#allocation2 + $0xb0] sm:$0xff]  ;;  %v102_v19 = vld [vmem:[#allocation2 + $0xb8] sm:$0xff]  ;;  %v1242_v12 = vmov 0.0   ;;  %p1186_p11 = scmp.lt.s32.totalorder %s722_s27, %s722_s27 }
  0x3d   :  { %953 = vmatprep.subr.bf16.mxu0 %v952_v9  ;;  %v958_v20 = vpack.c.bf16 %v84_v17, %v83_v16  ;;  %v960_v21 = vpack.c.bf16 %v102_v19, %v101_v18  ;;  %v85_v22 = vld [vmem:[#allocation2 + $0x30] sm:$0xff]  ;;  %v86_v23 = vld [vmem:[#allocation2 + $0x38] sm:$0xff]  ;;  %v103_v24 = vld [vmem:[#allocation2 + $0xc0] sm:$0xff]  ;;  %864 = vmatprep.mubr.msk.f32.mxu1 %vm1241_vm0, %v1242_v12 }
  0x3e   :  { %v104_v25 = vld [vmem:[#allocation2 + $0xc8] sm:$0xff]  ;;  %v189_v27 = vld [vmem:[%s1548_s3] sm:$0xff]  ;;  %v962_v29 = vpack.c.bf16 %v86_v23, %v85_v22  ;;  %v191_v31 = vld [vmem:[%s1548_s3 + $0x10] sm:$0xff] }
  0x3f   :  { %v78_v26 = vld [vmem:[%s1545_s0 + $0x8] sm:$0xff]  ;;  %v192_v32 = vld [vmem:[%s1548_s3 + $0x18] sm:$0xff]  ;;  %v964_v33 = vpack.c.bf16 %v104_v25, %v103_v24  ;;  %v87_v34 = vld [vmem:[#allocation2 + $0x40] sm:$0xff] }
  0x40   :  { %955 = vmatpush3.bf16.msra.mxu0 %v954_v14  ;;  %182 = vmatprep.mubr.f32.mxu0 %v78_v26  ;;  %v190_v28 = vld [vmem:[%s1548_s3 + $0x8] sm:$0xff]  ;;  %v105_v36 = vld [vmem:[#allocation2 + $0xd0] sm:$0xff]  ;;  %v106_v37 = vld [vmem:[#allocation2 + $0xd8] sm:$0xff]  ;;  %v984_v38 = vpack.c.bf16 %v192_v32, %v191_v31 }
  0x41   :  { %957 = vmatprep.subr.bf16.mxu0 %v956_v15  ;;  %v981_v30 = vpack.c.bf16 %v190_v28, %v189_v27  ;;  %v88_v35 = vld [vmem:[#allocation2 + $0x48] sm:$0xff]  ;;  %v193_v39 = vld [vmem:[%s1548_s3 + $0x20] sm:$0xff]  ;;  %v968_v42 = vpack.c.bf16 %v106_v37, %v105_v36  ;;  %v89_v43 = vld [vmem:[#allocation2 + $0x50] sm:$0xff] }
  0x42   :  { %v194_v40 = vld [vmem:[%s1548_s3 + $0x28] sm:$0xff]  ;;  %v966_v41 = vpack.c.bf16 %v88_v35, %v87_v34  ;;  %v90_v44 = vld [vmem:[#allocation2 + $0x58] sm:$0xff]  ;;  %v107_v45 = vld [vmem:[#allocation2 + $0xe0] sm:$0xff] }
  0x43   :  { %982 = vmatpush3.bf16.msra.mxu1 %v981_v30  ;;  %v108_v46 = vld [vmem:[#allocation2 + $0xe8] sm:$0xff]  ;;  %v987_v47 = vpack.c.bf16 %v194_v40, %v193_v39  ;;  %v195_v48 = vld [vmem:[%s1548_s3 + $0x30] sm:$0xff]  ;;  %v196_v49 = vld [vmem:[%s1548_s3 + $0x38] sm:$0xff]  ;;  %v970_v50 = vpack.c.bf16 %v90_v44, %v89_v43 }
  0x44   :  { %959 = vmatpush3.bf16.msra.mxu0 %v958_v20  ;;  %983 = vmatprep.subr.bf16.mxu1 %v1240_v0  ;;  %v972_v51 = vpack.c.bf16 %v108_v46, %v107_v45  ;;  %v91_v52 = vld [vmem:[#allocation2 + $0x60] sm:$0xff]  ;;  %v92_v53 = vld [vmem:[#allocation2 + $0x68] sm:$0xff]  ;;  %v109_v54 = vld [vmem:[#allocation2 + $0xf0] sm:$0xff]  ;;  %v990_v56 = vpack.c.bf16 %v196_v49, %v195_v48 }
  0x45   :  { %961 = vmatprep.subr.bf16.mxu0 %v960_v21  ;;  %v110_v55 = vld [vmem:[#allocation2 + $0xf8] sm:$0xff]  ;;  %v197_v57 = vld [vmem:[%s1548_s3 + $0x40] sm:$0xff]  ;;  %v198_v58 = vld [vmem:[%s1548_s3 + $0x48] sm:$0xff]  ;;  %v974_v59 = vpack.c.bf16 %v92_v53, %v91_v52 }
  0x46   :  { %v976_v60 = vpack.c.bf16 %v110_v55, %v109_v54  ;;  %v93_v61 = vld [vmem:[#allocation2 + $0x70] sm:$0xff]  ;;  %v94_v62 = vld [vmem:[#allocation2 + $0x78] sm:$0xff]  ;;  %v993_v63 = vpack.c.bf16 %v198_v58, %v197_v57  ;;  %v77_v5 = vld [vmem:[%s1545_s0] sm:$0xff]  ;;  %s1245_s0 = smov 64  }
  0x47   :  { %985 = vmatpush3.bf16.msra.mxu1 %v984_v38  ;;  %v199_v1 = vld [vmem:[%s1548_s3 + $0x50] sm:$0xff]  ;;  %v200_v2 = vld [vmem:[%s1548_s3 + $0x58] sm:$0xff]  ;;  %v978_v3 = vpack.c.bf16 %v94_v62, %v93_v61  ;;  %v201_v6 = vld [vmem:[%s1548_s3 + $0x60] sm:$0xff] }
  0x48   :  { %963 = vmatpush3.bf16.msra.mxu0 %v962_v29  ;;  %986 = vmatprep.subr.bf16.mxu1 %v1240_v0  ;;  %v996_v4 = vpack.c.bf16 %v200_v2, %v199_v1  ;;  %v202_v7 = vld [vmem:[%s1548_s3 + $0x68] sm:$0xff]  ;;  %v203_v9 = vld [vmem:[%s1548_s3 + $0x70] sm:$0xff]  ;;  %v204_v10 = vld [vmem:[%s1548_s3 + $0x78] sm:$0xff]  ;;  %s1181_s3 = scalar_lea.vmem %s722_s27, 128 }
  0x49   :  { %965 = vmatprep.subr.bf16.mxu0 %v964_v33  ;;  %v999_v8 = vpack.c.bf16 %v202_v7, %v201_v6  ;;  %v1002_v11 = vpack.c.bf16 %v204_v10, %v203_v9  ;;  %v283_v13 = vld [vmem:[%s1549_s4] sm:$0xff]  ;;  %v284_v14 = vld [vmem:[%s1549_s4 + $0x8] sm:$0xff]  ;;  %v285_v15 = vld [vmem:[%s1549_s4 + $0x10] sm:$0xff]  ;;  %p1182_p10 = scmp.ne.s32.totalorder %s722_s27, %s1181_s3  ;;  %p1187_p12 = scmp.lt.s32.totalorder %s1181_s3, %s1181_s3 }
  0x4a   :  { %v1005_v16 = vpack.c.bf16 %v284_v14, %v283_v13  ;;  %v286_v17 = vld [vmem:[%s1549_s4 + $0x18] sm:$0xff]  ;;  %v287_v19 = vld [vmem:[%s1549_s4 + $0x20] sm:$0xff]  ;;  %v288_v20 = vld [vmem:[%s1549_s4 + $0x28] sm:$0xff] }
  0x4b   :  { %988 = vmatpush3.bf16.msra.mxu1 %v987_v47  ;;  %v1008_v18 = vpack.c.bf16 %v286_v17, %v285_v15  ;;  %v1011_v21 = vpack.c.bf16 %v288_v20, %v287_v19  ;;  %v289_v22 = vld [vmem:[%s1549_s4 + $0x30] sm:$0xff]  ;;  %v290_v23 = vld [vmem:[%s1549_s4 + $0x38] sm:$0xff]  ;;  %v291_v25 = vld [vmem:[%s1549_s4 + $0x40] sm:$0xff]  ;;  %p1188_p13 = por %p1187_p12, %p1186_p11 }
  0x4c   :  { %967 = vmatpush3.bf16.msra.mxu0 %v966_v41  ;;  %989 = vmatprep.subr.bf16.mxu1 %v1240_v0  ;;  %v1014_v24 = vpack.c.bf16 %v290_v23, %v289_v22  ;;  %v292_v26 = vld [vmem:[%s1549_s4 + $0x48] sm:$0xff]  ;;  %v293_v28 = vld [vmem:[%s1549_s4 + $0x50] sm:$0xff]  ;;  %v294_v29 = vld [vmem:[%s1549_s4 + $0x58] sm:$0xff] }
  0x4d   :  { %969 = vmatprep.subr.bf16.mxu0 %v968_v42  ;;  %v1017_v27 = vpack.c.bf16 %v292_v26, %v291_v25  ;;  %v1020_v30 = vpack.c.bf16 %v294_v29, %v293_v28  ;;  %v295_v31 = vld [vmem:[%s1549_s4 + $0x60] sm:$0xff]  ;;  %v296_v32 = vld [vmem:[%s1549_s4 + $0x68] sm:$0xff]  ;;  %v297_v40 = vld [vmem:[%s1549_s4 + $0x70] sm:$0xff]  ;;  %p1189_p0 = pnand %p1188_p13, %p1182_p10 }
  0x4e   :  { %v1023_v33 = vpack.c.bf16 %v296_v32, %v295_v31  ;;  %v735_v35 = vld [vmem:[%s1553_s8] ss:$0 sm:$0xff]  ;;  %v298_v41 = vld [vmem:[%s1549_s4 + $0x78] sm:$0xff]  ;;  %v736_v44 = vld [vmem:[%s1553_s8 + $0x1] ss:$0 sm:$0xff] }
  0x4f   :  { %991 = vmatpush3.bf16.msra.mxu1 %v990_v56  ;;  %v1026_v42 = vpack.c.bf16 %v298_v41, %v297_v40  ;;  %v379_v43 = vld [vmem:[%s1546_s1] sm:$0xff]  ;;  %v393_v53 = vld [vmem:[%s1550_s5 + $0x18] sm:$0xff]  ;;  %v477_v2 = vld [vmem:[#allocation5 + $0x8] sm:$0xff] }
  0x50   :  { %971 = vmatpush3.bf16.msra.mxu0 %v970_v50  ;;  %992 = vmatprep.subr.bf16.mxu1 %v1240_v0  ;;  %v390_v49 = vld [vmem:[%s1550_s5] sm:$0xff]  ;;  %v391_v50 = vld [vmem:[%s1550_s5 + $0x8] sm:$0xff]  ;;  %v478_v6 = vld [vmem:[#allocation5 + $0x10] sm:$0xff] }
  0x51   :  { %973 = vmatprep.subr.bf16.mxu0 %v972_v51  ;;  %381 = vrot.lane.b32.xlu0 %v379_v43, %s1243_s26  ;;  %v392_v51 = vld [vmem:[%s1550_s5 + $0x10] sm:$0xff]  ;;  %v1029_v52 = vpack.c.bf16 %v391_v50, %v390_v49  ;;  %v737_v55 = vld [vmem:[%s1553_s8 + $0x2] ss:$0 sm:$0xff]  ;;  %s1244_s5 = smov 96   ;;  %v479_v7 = vld [vmem:[#allocation5 + $0x18] sm:$0xff] }
  0x52   :  { %v1032_v54 = vpack.c.bf16 %v393_v53, %v392_v51  ;;  %v476_v1 = vld [vmem:[#allocation5] sm:$0xff]  ;;  %v481_v10 = vld [vmem:[#allocation5 + $0x28] sm:$0xff]  ;;  %v482_v13 = vld [vmem:[#allocation5 + $0x30] sm:$0xff] }
  0x53   :  { %994 = vmatpush3.bf16.msra.mxu1 %v993_v63  ;;  %v480_v9 = vld [vmem:[#allocation5 + $0x20] sm:$0xff]  ;;  %v483_v14 = vld [vmem:[#allocation5 + $0x38] sm:$0xff]  ;;  %v485_v17 = vld [vmem:[#allocation5 + $0x48] sm:$0xff] }
  0x54   :  { %975 = vmatpush3.bf16.msra.mxu0 %v974_v59  ;;  %995 = vmatprep.subr.bf16.mxu1 %v1240_v0  ;;  %v1044_v15 = vpack.c.bf16 %v483_v14, %v482_v13  ;;  %v487_v19 = vld [vmem:[#allocation5 + $0x58] sm:$0xff]  ;;  %v489_v22 = vld [vmem:[#allocation5 + $0x68] sm:$0xff]  ;;  %v570_v29 = vld [vmem:[#allocation7] sm:$0xff] }
  0x55   :  { %977 = vmatprep.subr.bf16.mxu0 %v976_v60  ;;  %v491_v25 = vld [vmem:[#allocation5 + $0x78] sm:$0xff]  ;;  %v572_v31 = vld [vmem:[#allocation7 + $0x10] sm:$0xff]  ;;  %v575_v32 = vld [vmem:[#allocation7 + $0x28] sm:$0xff] }
  0x56   :  { %v573_v28 = vld [vmem:[#allocation7 + $0x18] sm:$0xff]  ;;  %v578_v41 = vld [vmem:[#allocation7 + $0x40] sm:$0xff]  ;;  %v583_v43 = vld [vmem:[#allocation7 + $0x68] sm:$0xff] }
  0x57   :  { %997 = vmatpush3.bf16.msra.mxu1 %v996_v4  ;;  %v1035_v4 = vpack.c.bf16 %v477_v2, %v476_v1  ;;  %v587_v49 = vld [vmem:[#allocation7 + $0x88] sm:$0xff]  ;;  %v589_v50 = vld [vmem:[#allocation7 + $0x98] sm:$0xff]  ;;  %v586_v53 = vld [vmem:[#allocation7 + $0x80] sm:$0xff] }
  0x58   :  { %979 = vmatpush3.bf16.msra.mxu0 %v978_v3  ;;  %998 = vmatprep.subr.bf16.mxu1 %v1240_v0 }
  0x59   :  { %1004 = vmatprep.subr.bf16.mxu0 %v1240_v0 }
  0x5b   :  { %183 = vmatmul.mubr.f32.vlgmr.msra.gmra.mrb[0].mxu0 %v77_v5  ;;  %1000 = vmatpush3.bf16.msra.mxu1 %v999_v8  ;;  %v1038_v8 = vpack.c.bf16 %v479_v7, %v478_v6 }
  0x5c   :  { %1001 = vmatprep.subr.bf16.mxu1 %v1240_v0  ;;  %899 = vmatprep.mubr.msk.f32.mxu0 %vm1241_vm0, %v1242_v12 }
  0x5d   :  { %1006 = vmatpush3.bf16.msra.mxu0 %v1005_v16  ;;  %v484_v16 = vld [vmem:[#allocation5 + $0x40] sm:$0xff] }
  0x5e   :  { %1007 = vmatprep.subr.bf16.mxu0 %v1240_v0 }
  0x5f   :  { %1003 = vmatpush3.bf16.msra.mxu1 %v1002_v11  ;;  %v1041_v11 = vpack.c.bf16 %v481_v10, %v480_v9  ;;  %v738_v9 = vld [vmem:[%s1553_s8 + $0x3] ss:$0 sm:$0xff] }
  0x60   :  { %1028 = vmatprep.subr.bf16.mxu1 %v1240_v0 }
  0x61   :  { %1009 = vmatpush3.bf16.msra.mxu0 %v1008_v18  ;;  %v1047_v18 = vpack.c.bf16 %v485_v17, %v484_v16  ;;  %v601_v16 = vld [vmem:[#allocation7 + $0xf8] sm:$0xff] }
  0x62   :  { %1010 = vmatprep.subr.bf16.mxu0 %v1240_v0 }
  0x65   :  { %1012 = vmatpush3.bf16.msra.mxu0 %v1011_v21  ;;  %v488_v21 = vld [vmem:[#allocation5 + $0x60] sm:$0xff] }
  0x66   :  { %1013 = vmatprep.subr.bf16.mxu0 %v1240_v0  ;;  %v1053_v23 = vpack.c.bf16 %v489_v22, %v488_v21 }
  0x69   :  { %1015 = vmatpush3.bf16.msra.mxu0 %v1014_v24  ;;  %v490_v24 = vld [vmem:[#allocation5 + $0x70] sm:$0xff] }
  0x6a   :  { %1016 = vmatprep.subr.bf16.mxu0 %v1240_v0  ;;  %v1056_v26 = vpack.c.bf16 %v491_v25, %v490_v24 }
  0x6d   :  { %1018 = vmatpush3.bf16.msra.mxu0 %v1017_v27  ;;  %v571_v27 = vld [vmem:[#allocation7 + $0x8] sm:$0xff] }
  0x6e   :  { %1019 = vmatprep.subr.bf16.mxu0 %v1240_v0 }
  0x71   :  { %1021 = vmatpush3.bf16.msra.mxu0 %v1020_v30  ;;  %v1058_v30 = vpack.c.bf16 %v573_v28, %v571_v27 }
  0x72   :  { %1022 = vmatprep.subr.bf16.mxu0 %v1240_v0 }
  0x75   :  { %1024 = vmatpush3.bf16.msra.mxu0 %v1023_v33  ;;  %v577_v33 = vld [vmem:[#allocation7 + $0x38] sm:$0xff] }
  0x76   :  { %1025 = vmatprep.subr.bf16.mxu0 %v1240_v0 }
  0x79   :  { %1027 = vmatpush3.bf16.msra.mxu0 %v1026_v42  ;;  %v580_v42 = vld [vmem:[#allocation7 + $0x50] sm:$0xff] }
  0x7a   :  { %1059 = vmatprep.subr.bf16.mxu0 %v1058_v30 }
  0xc3   :  { %v382_v61 = vpop.permute.xlu0 %381 }
 0x12e   :  { %v773_v34 = vpop.f32.mrb[0].mxu0 }
 0x12f   :  { %v774_v36 = vpop.f32.mrb[1].mxu0 }
 0x130   :  { %v775_v37 = vadd.f32 %v774_v36, %v773_v34  ;;  %v1060_v34 = vpack.c.bf16 %v572_v31, %v570_v29  ;;  %v574_v36 = vld [vmem:[#allocation7 + $0x20] sm:$0xff] }
 0x132   :  { %v185_v38 = vadd.f32 %v775_v37, %v735_v35  ;;  %v1062_v35 = vpack.c.bf16 %v577_v33, %v575_v32  ;;  %v576_v37 = vld [vmem:[#allocation7 + $0x30] sm:$0xff] }
 0x134   :  { %v188_v39 = vmax.f32 %v185_v38, 0.0  ;;  %v579_v38 = vld [vmem:[#allocation7 + $0x48] sm:$0xff] }
 0x136   :  { %865 = vmatmul.mubr.f32.vlgmr.msra.gmra.mrb[0].mxu1 %v188_v39  ;;  %v581_v39 = vld [vmem:[#allocation7 + $0x58] sm:$0xff] }
 0x137   :  { %910 = vmatprep.mubr.msk.f32.mxu1 %vm1241_vm0, %v1242_v12  ;;  %1030 = vmatpush3.bf16.msra.mxu1 %v1029_v52  ;;  %v1066_v40 = vpack.c.bf16 %v581_v39, %v579_v38  ;;  %v1074_v52 = vpack.c.bf16 %v589_v50, %v587_v49 }
 0x138   :  { %1031 = vmatprep.subr.bf16.mxu1 %v1240_v0 }
 0x13b   :  { %1033 = vmatpush3.bf16.msra.mxu1 %v1032_v54  ;;  %v588_v54 = vld [vmem:[#allocation7 + $0x90] sm:$0xff] }
 0x13c   :  { %1034 = vmatprep.subr.bf16.mxu1 %v1240_v0 }
 0x209   :  { %v278_v45 = vpop.f32.mrb[0].mxu1 }
 0x20a   :  { %v279_v46 = vadd.f32 %v736_v44, %v278_v45  ;;  %v866_v47 = vpop.f32.mrb[1].mxu1  ;;  %v585_v44 = vld [vmem:[#allocation7 + $0x78] sm:$0xff]  ;;  %v1068_v45 = vpack.c.bf16 %v580_v42, %v578_v41 }
 0x20b   :  { %v582_v47 = vld [vmem:[#allocation7 + $0x60] sm:$0xff] }
 0x20c   :  { %v282_v48 = vmax.f32 %v279_v46, 0.0  ;;  %v1070_v46 = vpack.c.bf16 %v585_v44, %v583_v43 }
 0x20e   :  { %900 = vmatmul.mubr.f32.vlgmr.msra.gmra.mrb[2].mxu0 %v282_v48  ;;  %v584_v48 = vld [vmem:[#allocation7 + $0x70] sm:$0xff] }
 0x20f   :  { %678 = vmatprep.mubr.f32.mxu0 %v1242_v12  ;;  %1061 = vmatpush1.bf16.msra.mxu0 %v1060_v34  ;;  %v1072_v51 = vpack.c.bf16 %v584_v48, %v582_v47 }
 0x210   :  { %1063 = vmatprep.subr.bf16.mxu0 %v1062_v35 }
 0x2e1   :  { %v372_v56 = vpop.f32.mrb[2].mxu0 }
 0x2e2   :  { %v1498_v57 = vadd.f32 %v737_v55, %v372_v56  ;;  %v901_v58 = vpop.f32.mrb[3].mxu0  ;;  %v591_v55 = vld [vmem:[#allocation7 + $0xa8] sm:$0xff]  ;;  %v593_v56 = vld [vmem:[#allocation7 + $0xb8] sm:$0xff] }
 0x2e3   :  { %v1076_v58 = vpack.c.bf16 %v588_v54, %v586_v53 }
 0x2e4   :  { %v376_v59 = vmul.f32 0.5, %v1498_v57 }
 0x2e6   :  { %v377_v60 = vmul.f32 1.442695, %v376_v59  ;;  %v1078_v59 = vpack.c.bf16 %v593_v56, %v591_v55 }
 0x2e8   :  { %1105 = vpow2.f32 %v377_v60  ;;  %v590_v60 = vld [vmem:[#allocation7 + $0xa0] sm:$0xff] }
 0x2f2   :  { %v1106_v62 = vpop.eup %1105 }
 0x2f3   :  { %v384_v63 = vmul.f32 %v1106_v62, %v382_v61  ;;  %v592_v61 = vld [vmem:[#allocation7 + $0xb0] sm:$0xff]  ;;  %v595_v62 = vld [vmem:[#allocation7 + $0xc8] sm:$0xff] }
 0x2f4   :  { %v1080_v1 = vpack.c.bf16 %v592_v61, %v590_v60 }
 0x2f5   :  { %386 = vrot.lane.b32.xlu0 %v384_v63, %s1244_s5  ;;  %v597_v63 = vld [vmem:[#allocation7 + $0xd8] sm:$0xff] }
 0x2f6   :  { %v1082_v2 = vpack.c.bf16 %v597_v63, %v595_v62 }
 0x367   :  { %v387_v3 = vpop.permute.xlu0 %386 }
 0x368   :  { %v389_v5 = vadd.f32 %v387_v3, %v1498_v57  ;;  %v594_v3 = vld [vmem:[#allocation7 + $0xc0] sm:$0xff] }
 0x36a   :  { %697 = vrot.lane.b32.xlu1 %v389_v5, %s1245_s0  ;;  %911 = vmatmul.mubr.msk.f32.vlgmr.msra.gmra.mrb[2].mxu1 %vm401_vm1, %v389_v5 }
 0x36b   :  { %1036 = vmatpush3.bf16.msra.mxu1 %v1035_v4  ;;  %945 = vmatprep.mubr.msk.f32.mxu1 %vm1241_vm0, %v1242_v12  ;;  %v486_v12 = vld [vmem:[#allocation5 + $0x50] sm:$0xff] }
 0x36c   :  { %1037 = vmatprep.subr.bf16.mxu1 %v1240_v0  ;;  %v1050_v20 = vpack.c.bf16 %v487_v19, %v486_v12  ;;  %v596_v4 = vld [vmem:[#allocation7 + $0xd0] sm:$0xff] }
 0x36d   :  { %v1084_v5 = vpack.c.bf16 %v596_v4, %v594_v3  ;;  %v600_v12 = vld [vmem:[#allocation7 + $0xf0] sm:$0xff] }
 0x36f   :  { %1039 = vmatpush3.bf16.msra.mxu1 %v1038_v8 }
 0x370   :  { %1040 = vmatprep.subr.bf16.mxu1 %v1240_v0 }
 0x373   :  { %1042 = vmatpush3.bf16.msra.mxu1 %v1041_v11 }
 0x374   :  { %1043 = vmatprep.subr.bf16.mxu1 %v1240_v0 }
 0x377   :  { %1045 = vmatpush3.bf16.msra.mxu1 %v1044_v15  ;;  %v599_v15 = vld [vmem:[#allocation7 + $0xe8] sm:$0xff] }
 0x378   :  { %1046 = vmatprep.subr.bf16.mxu1 %v1240_v0  ;;  %v1086_v17 = vpack.c.bf16 %v601_v16, %v599_v15 }
 0x37b   :  { %1048 = vmatpush3.bf16.msra.mxu1 %v1047_v18  ;;  %v598_v18 = vld [vmem:[#allocation7 + $0xe0] sm:$0xff] }
 0x37c   :  { %1049 = vmatprep.subr.bf16.mxu1 %v1240_v0  ;;  %v1088_v19 = vpack.c.bf16 %v600_v12, %v598_v18 }
 0x37f   :  { %1051 = vmatpush3.bf16.msra.mxu1 %v1050_v20 }
 0x380   :  { %1052 = vmatprep.subr.bf16.mxu1 %v1240_v0 }
 0x383   :  { %1054 = vmatpush3.bf16.msra.mxu1 %v1053_v23 }
 0x384   :  { %1055 = vmatprep.subr.bf16.mxu1 %v1240_v0  ;;  %v1064_v0 = vpack.c.bf16 %v576_v37, %v574_v36 }
 0x386   :  { %1065 = vmatpush1.bf16.msra.mxu0 %v1064_v0 }
 0x387   :  { %1057 = vmatpush3.bf16.msra.mxu1 %v1056_v26  ;;  %1067 = vmatprep.subr.bf16.mxu0 %v1066_v40 }
 0x38a   :  { %1069 = vmatpush1.bf16.msra.mxu0 %v1068_v45 }
 0x38b   :  { %1071 = vmatprep.subr.bf16.mxu0 %v1070_v46 }
 0x38e   :  { %1073 = vmatpush1.bf16.msra.mxu0 %v1072_v51 }
 0x38f   :  { %1075 = vmatprep.subr.bf16.mxu0 %v1074_v52 }
 0x392   :  { %1077 = vmatpush1.bf16.msra.mxu0 %v1076_v58 }
 0x393   :  { %1079 = vmatprep.subr.bf16.mxu0 %v1078_v59 }
 0x396   :  { %1081 = vmatpush1.bf16.msra.mxu0 %v1080_v1 }
 0x397   :  { %1083 = vmatprep.subr.bf16.mxu0 %v1082_v2 }
 0x39a   :  { %1085 = vmatpush1.bf16.msra.mxu0 %v1084_v5 }
 0x39b   :  { %1087 = vmatprep.subr.bf16.mxu0 %v1086_v17 }
 0x39e   :  { %1089 = vmatpush1.bf16.msra.mxu0 %v1088_v19 }
 0x3dc   :  { %v698_v6 = vpop.permute.xlu1 %697 }
 0x3dd   :  { %v701_v7 = vsel %vm700_vm2, %v1498_v57, %v698_v6  ;;  %v740_v57 = vld [vmem:[%s1553_s8 + $0x4] ss:$0 sm:$0xff] }
 0x3de   :  { %v703_v8 = vsel %vm702_vm3, %v701_v7, 0.0 }
 0x3df   :  { %704 = vst [vmem:[#allocation9] sm:$0xff] %v703_v8 }
 0x43d   :  { %v471_v10 = vpop.f32.mrb[2].mxu1 }
 0x43e   :  { %v472_v11 = vadd.f32 %v738_v9, %v471_v10  ;;  %v912_v13 = vpop.f32.mrb[3].mxu1 }
 0x440   :  { %v475_v14 = vmax.f32 %v472_v11, 0.0 }
 0x442   :  { %946 = vmatmul.mubr.f32.vlgmr.msra.gmra.mrb[4].mxu1 %v475_v14 }
 0x515   :  { %v565_v20 = vpop.f32.mrb[4].mxu1 }
 0x516   :  { %v566_v21 = vadd.f32 %v740_v57, %v565_v20  ;;  %v947_v22 = vpop.f32.mrb[5].mxu1 }
 0x518   :  { %v569_v23 = vmax.f32 %v566_v21, 0.0 }
 0x51a   :  { %679 = vmatmul.mubr.f32.vlgmr.msra.gmra.mrb[4].mxu0 %v569_v23 }
 0x51b   :  { %1192 = shalt.err (!%p1189_p0)
}
 0x51c   :  { %s1193_s30 = scalar_lea.hbm %s1555_s10, 128 }
 0x51d   :  { %p1194_p1 = scmp.ne.s32.totalorder %s1555_s10, %s1193_s30  ;;  %p1197_p2 = scmp.lt.u32.totalorder %s1193_s30, %s1555_s10 }
 0x51f   :  { %p1199_p3 = pnand %p1197_p2, %p1194_p1 }
 0x521   :  { %1202 = shalt.err (!%p1199_p3)
}
 0x522   :  { %724 = dma.vmem_to_hbm [thread:$0]  %s722_s27, 128, %s1555_s10, [#allocation10]   ;;  %v604_v24 = vlaneseq  ;;  %v602_v27 = vld [vmem:[%s1553_s8 + $0x5] sm:$0x3] }
 0x523   :  { %s1247_s8 = smov [#allocation8]  }
 0x524   :  { %v605_v25 = vshrl.u32 %v604_v24, 7  ;;  %s711_s10 = sshll.u32 %s1247_s8, 4  ;;  %s712_s10 = int_to_ptr.vmem [resolvable:$true] %s711_s10 }
 0x525   :  { %s1203_s13 = scalar_lea.vmem %s712_s10, 256  ;;  %p1208_p5 = scmp.lt.s32.totalorder %s712_s10, %s712_s10 }
 0x526   :  { %v606_v26 = vsub.s32 0, %v605_v25  ;;  %v610_v28 = vsub.s32 1, %v605_v25  ;;  %p1204_p4 = scmp.ne.s32.totalorder %s712_s10, %s1203_s13  ;;  %p1209_p6 = scmp.lt.s32.totalorder %s1203_s13, %s1203_s13 }
 0x528   :  { %v607_v29 = vrot.slane %v602_v27, %v606_v26  ;;  %v611_v30 = vrot.slane %v602_v27, %v610_v28  ;;  %p1210_p7 = por %p1209_p6, %p1208_p5 }
 0x52a   :  { %p1211_p8 = pnand %p1210_p7, %p1204_p4 }
 0x5ed   :  { %v680_v31 = vpop.f32.mrb[4].mxu0 }
 0x5ee   :  { %v681_v32 = vadd.f32 %v680_v31, %v607_v29  ;;  %v682_v33 = vpop.f32.mrb[5].mxu0 }
 0x5ef   :  { %v683_v34 = vadd.f32 %v682_v33, %v611_v30 }
 0x5f0   :  { %v685_v35 = vsub.f32 0.0, %v681_v32 }
 0x5f1   :  { %v686_v36 = vsub.f32 0.0, %v683_v34 }
 0x5f2   :  { %v687_v37 = vmul.f32 1.442695, %v685_v35 }
 0x5f3   :  { %v689_v38 = vmul.f32 1.442695, %v686_v36 }
 0x5f4   :  { %1107 = vpow2.f32 %v687_v37 }
 0x5f5   :  { %1109 = vpow2.f32 %v689_v38 }
 0x5fe   :  { %v1108_v39 = vpop.eup %1107 }
 0x5ff   :  { %v1110_v0 = vpop.eup %1109  ;;  %v691_v40 = vadd.f32 1.0, %v1108_v39 }
 0x600   :  { %v692_v41 = vadd.f32 1.0, %v1110_v0 }
 0x601   :  { %1111 = vrcp.f32 %v691_v40 }
 0x602   :  { %1113 = vrcp.f32 %v692_v41 }
 0x60b   :  { %v1112_v42 = vpop.eup %1111 }
 0x60c   :  { %v1114_v43 = vpop.eup %1113  ;;  %695 = vst [vmem:[#allocation8] sm:$0xff] %v1112_v42 }
 0x60d   :  { %696 = vst [vmem:[#allocation8 + $0x8] sm:$0xff] %v1114_v43 }
 0x60e   :  { %1214 = shalt.err (!%p1211_p8)
}
 0x60f   :  { %s1215_s17 = scalar_lea.hbm %s1554_s9, 256 }
 0x610   :  { %p1216_p9 = scmp.ne.s32.totalorder %s1554_s9, %s1215_s17  ;;  %p1219_p10 = scmp.lt.u32.totalorder %s1215_s17, %s1554_s9 }
 0x612   :  { %p1221_p11 = pnand %p1219_p10, %p1216_p9 }
 0x614   :  { %1224 = shalt.err (!%p1221_p11)
}
 0x615   :  { %714 = dma.vmem_to_hbm [thread:$0]  %s712_s10, 256, %s1554_s9, [#allocation4]  }
 0x616   :  { %1229 = dma.done.wait [#allocation4], 256  }
 0x617   :  { %1230 = vsyncadd [#allocation4], 4294967040 }
 0x618   :  { %1231 = dma.done.wait [#allocation10], 128  }
 0x619   :  { %1232 = vsyncadd [#allocation10], 4294967168 }
 0x61a   :  { %731 = vsyncpa [#allocation3], 1 }
 0x61b   :  { %732 = vsyncpa [#allocation6], 1 }
 0x61c   :  { %733 = vsyncpa [#allocation4], 1 }
 0x61d   :  { %734 = vsyncpa [#allocation10], 1 }

</bundles_post_ra>
